<compile_context>
chip_gen: v7x
topology: tpu7x:2x2x1
jax: 0.10.0
libtpu: 0.0.40
codegen_flags: <defaults>
</compile_context>

<pallas_src>
import functools

import jax
import jax.numpy as jnp
from jax import lax
from jax.experimental import pallas as pl
from jax.experimental.pallas import tpu as pltpu

_NORM_EPS = 1e-12                      # torch.nn.functional.normalize default eps
_EPS_SQ = _NORM_EPS * _NORM_EPS        # compared against the *squared* norm
_MAX_ALL_ROW_TILE = 512                # max rows / grid step for the sids=None path
_GATHER_ROW_TILE = 256                 # rows / grid step for the gather path
# Above this, the table is not kept resident in VMEM (v7x has only 64 MiB).
_VMEM_TABLE_BYTES_LIMIT = 40 * 1024 * 1024


def _round_up(x, m):
    return ((x + m - 1) // m) * m


def _pick_all_tile(capacity, d_pad):
    """Largest row tile (multiple of 8, <=512) keeping 4 buffers under ~10 MiB."""
    budget_rows = (10 << 20) // (4 * d_pad * 4)        # in+out, double-buffered, f32
    tile = max(8, min(_MAX_ALL_ROW_TILE, (budget_rows // 8) * 8))
    return min(tile, _round_up(capacity, 8))


# ---------------------------------------------------------------------------
# Streaming row-normalize (used for sids=None and for the big-table fallback)
# ---------------------------------------------------------------------------
def _normalize_all_kernel(w_ref, o_ref):
    x = w_ref[...]                                           # (TILE, D)
    sq = jnp.sum(x * x, axis=-1, keepdims=True)              # (TILE, 1)
    o_ref[...] = x * lax.rsqrt(jnp.maximum(sq, _EPS_SQ))     # one fused pass


@functools.partial(jax.jit, static_argnames=("tile",))
def _normalize_all(weights_padded, *, tile):
    cap_pad, d_pad = weights_padded.shape
    grid = (cap_pad // tile,)
    return pl.pallas_call(
        _normalize_all_kernel,
        out_shape=jax.ShapeDtypeStruct((cap_pad, d_pad), weights_padded.dtype),
        grid_spec=pltpu.PrefetchScalarGridSpec(
            num_scalar_prefetch=0,
            grid=grid,
            in_specs=[pl.BlockSpec((tile, d_pad), lambda i: (i, 0))],
            out_specs=pl.BlockSpec((tile, d_pad), lambda i: (i, 0)),
        ),
        compiler_params=pltpu.CompilerParams(
            dimension_semantics=("parallel",)),   # independent tiles -> megacore OK
    )(weights_padded)


# ---------------------------------------------------------------------------
# sids path: in-kernel gather + normalize
# ---------------------------------------------------------------------------
def _gather_normalize_kernel(sids_ref, w_hbm, o_ref, w_vmem, sem):
    """Gather rows of the prototype table by sids and L2-normalize them.

    sids_ref : SMEM int32 [n_pad]          (scalar-prefetched row ids)
    w_hbm    : HBM  f32   [cap_pad, D]     (full prototype table, memory_space=ANY)
    o_ref    : VMEM f32   [ROW_TILE, D]    (current output tile)
    w_vmem   : VMEM f32   [cap_pad, D]     (single-buffered resident table copy)
    sem      : DMA semaphore
    """
    row_tile = o_ref.shape[0]
    step = pl.program_id(0)

    # Copy the table HBM -> VMEM exactly once (grid is sequential: "arbitrary";
    # scratch persists across grid steps).
    @pl.when(step == 0)
    def _():
        cp = pltpu.make_async_copy(w_hbm, w_vmem, sem)
        cp.start()
        cp.wait()

    base = step * row_tile

    # Gather ROW_TILE rows into the output block (8 rows per loop body).
    def gather_chunk(c, carry):
        r0 = pl.multiple_of(c * 8, 8)
        for rr in range(8):                       # static 8x unroll in the body
            r = r0 + rr
            sid = sids_ref[base + r]
            o_ref[pl.ds(r, 1), :] = w_vmem[pl.ds(sid, 1), :]
        return carry

    lax.fori_loop(0, row_tile // 8, gather_chunk, 0)

    # ONE fused, fully vectorized normalization pass over the whole tile.
    x = o_ref[...]                                           # (ROW_TILE, D)
    sq = jnp.sum(x * x, axis=-1, keepdims=True)              # (ROW_TILE, 1)
    o_ref[...] = x * lax.rsqrt(jnp.maximum(sq, _EPS_SQ))     # unmasked full-tile store


@functools.partial(jax.jit, static_argnames=("row_tile",))
def _gather_normalize(sids_padded, weights_padded, *, row_tile):
    n_pad, = sids_padded.shape
    cap_pad, d_pad = weights_padded.shape
    grid = (n_pad // row_tile,)

    table_bytes = cap_pad * d_pad * 4
    # table (single buffer) + double-buffered output tiles + headroom
    vmem_limit = table_bytes + 4 * row_tile * d_pad * 4 + (4 << 20)
    vmem_limit = int(min(max(vmem_limit, 16 << 20), 64 << 20))

    return pl.pallas_call(
        _gather_normalize_kernel,
        out_shape=jax.ShapeDtypeStruct((n_pad, d_pad), weights_padded.dtype),
        grid_spec=pltpu.PrefetchScalarGridSpec(
            num_scalar_prefetch=1,
            grid=grid,
            in_specs=[
                # table stays in HBM; copied once into the VMEM scratch
                pl.BlockSpec(memory_space=pl.ANY),
            ],
            out_specs=pl.BlockSpec((row_tile, d_pad), lambda i, sids: (i, 0)),
            scratch_shapes=[
                pltpu.VMEM((cap_pad, d_pad), weights_padded.dtype),
                pltpu.SemaphoreType.DMA,
            ],
        ),
        compiler_params=pltpu.CompilerParams(
            dimension_semantics=("arbitrary",),   # sequential: step-0 table copy
            vmem_limit_bytes=vmem_limit),
    )(sids_padded, weights_padded)


# ---------------------------------------------------------------------------
# Module wrapper
# ---------------------------------------------------------------------------
class NekoSampledSementicBranch:
    """JAX/Pallas port of neko_sampled_sementic_branch."""

    def __init__(self, feat_ch, capacity, spks=None, *, key=None):
        del spks  # unused by the reference module's forward
        if key is None:
            key = jax.random.PRNGKey(0)
        # torch.rand(...) * 2 - 1  ==  U(-1, 1)
        self.weights = jax.random.uniform(
            key, (capacity, feat_ch), dtype=jnp.float32, minval=-1.0, maxval=1.0)
        self.capacity = capacity
        self.feat_ch = feat_ch

        # (8, 128)-aligned padded copy of the table used by both kernels.
        d_pad = _round_up(feat_ch, 128)
        self._all_tile = _pick_all_tile(capacity, d_pad)
        cap_pad = _round_up(capacity, self._all_tile)
        self._d_pad = d_pad
        self._weights_padded = (
            jnp.zeros((cap_pad, d_pad), jnp.float32)
            .at[:capacity, :feat_ch].set(self.weights))
        self._table_fits_vmem = (cap_pad * d_pad * 4) <= _VMEM_TABLE_BYTES_LIMIT

    def __call__(self, sids=None):
        if sids is None:
            out = _normalize_all(self._weights_padded, tile=self._all_tile)
            return out[:self.capacity, :self.feat_ch]

        sids = jnp.asarray(sids, dtype=jnp.int32)
        n = int(sids.shape[0])
        # OOB ids would be an unchecked VMEM read on TPU -> clamp defensively.
        sids = jnp.clip(sids, 0, self.capacity - 1)

        if self._table_fits_vmem:
            row_tile = min(_GATHER_ROW_TILE, _round_up(max(n, 1), 8))
            n_pad = _round_up(n, row_tile)
            if n_pad != n:
                sids = jnp.concatenate(
                    [sids, jnp.zeros((n_pad - n,), dtype=jnp.int32)])
            out = _gather_normalize(sids, self._weights_padded, row_tile=row_tile)
            return out[:n, :self.feat_ch]

        # Huge-table fallback: XLA row gather (only the sampled rows touch HBM),
        # then the same Pallas normalize kernel over the gathered block.
        tile = _pick_all_tile(max(n, 1), self._d_pad)
        n_pad = _round_up(max(n, 1), tile)
        rows = jnp.zeros((n_pad, self._d_pad), jnp.float32)
        rows = rows.at[:n].set(self._weights_padded[sids])
        out = _normalize_all(rows, tile=tile)
        return out[:n, :self.feat_ch]


def _reference(weights, sids=None):
    w = weights if sids is None else weights[jnp.asarray(sids, jnp.int32)]
    nrm = jnp.sqrt(jnp.sum(w * w, axis=-1, keepdims=True))
    return w / jnp.maximum(nrm, _NORM_EPS)


if __name__ == "__main__":
    # --- case 1: aligned shapes -------------------------------------------
    feat_ch, capacity, spks = 128, 64, 4
    branch = NekoSampledSementicBranch(feat_ch, capacity, spks,
                                       key=jax.random.PRNGKey(0))

    out_all = jax.block_until_ready(branch())
    ref_all = _reference(branch.weights)
    assert out_all.shape == (capacity, feat_ch)
    assert jnp.allclose(out_all, ref_all, atol=1e-5, rtol=1e-5)

    sids = jnp.array([3, 7, 0, 5, 63, 12, 12, 1, 9, 30], dtype=jnp.int32)
    out_sel = jax.block_until_ready(branch(sids))
    ref_sel = _reference(branch.weights, sids)
    assert out_sel.shape == (sids.shape[0], feat_ch)
    assert jnp.allclose(out_sel, ref_sel, atol=1e-5, rtol=1e-5)

    # --- case 2: non-aligned feat_ch / capacity (exercise padding) ---------
    branch2 = NekoSampledSementicBranch(96, 20, spks, key=jax.random.PRNGKey(1))

    out_all2 = jax.block_until_ready(branch2())
    ref_all2 = _reference(branch2.weights)
    assert out_all2.shape == (20, 96)
    assert jnp.allclose(out_all2, ref_all2, atol=1e-5, rtol=1e-5)

    sids2 = jnp.array([19, 0, 7, 7, 3], dtype=jnp.int32)
    out_sel2 = jax.block_until_ready(branch2(sids2))
    ref_sel2 = _reference(branch2.weights, sids2)
    assert out_sel2.shape == (5, 96)
    assert jnp.allclose(out_sel2, ref_sel2, atol=1e-5, rtol=1e-5)

    # --- case 3: multi-tile gather (n > one row tile, multi-step grid) -----
    branch3 = NekoSampledSementicBranch(256, 200, spks, key=jax.random.PRNGKey(2))
    sids3 = jax.random.randint(jax.random.PRNGKey(3), (300,), 0, 200,
                               dtype=jnp.int32)
    out_sel3 = jax.block_until_ready(branch3(sids3))
    ref_sel3 = _reference(branch3.weights, sids3)
    assert out_sel3.shape == (300, 256)
    assert jnp.allclose(out_sel3, ref_sel3, atol=1e-5, rtol=1e-5)

    print("KERNEL_OK")
</pallas_src>

<mosaic_0001>
module attributes {stable_mosaic.version = 11 : i64} {
  func.func @_normalize_all_kernel(%arg0: i32, %arg1: memref<64x128xf32, #tpu.memory_space<vmem>>, %arg2: memref<64x128xf32, #tpu.memory_space<vmem>>) attributes {dimension_semantics = [#tpu.dimension_semantics<parallel>], iteration_bounds = array<i64: 1>, scalar_prefetch = 0 : i64, scratch_operands = 0 : i64, tpu.core_type = #tpu.core_type<tc>, window_params = [{transform_indices = @transform_0, window_bounds = array<i64: 64, 128>}, {transform_indices = @transform_1, window_bounds = array<i64: 64, 128>}]} {
    %c0 = arith.constant 0 : index
    %c0_0 = arith.constant 0 : index
    %0 = vector.load %arg1[%c0, %c0_0] : memref<64x128xf32, #tpu.memory_space<vmem>>, vector<64x128xf32>
    %1 = arith.mulf %0, %0 : vector<64x128xf32>
    %cst = arith.constant dense<0.000000e+00> : vector<64xf32>
    %2 = vector.multi_reduction <add>, %1, %cst [1] : vector<64x128xf32> to vector<64xf32>
    %3 = vector.shape_cast %2 : vector<64xf32> to vector<64x1xf32>
    %cst_1 = arith.constant 1.000000e-24 : f32
    %4 = vector.broadcast %cst_1 : f32 to vector<64x1xf32>
    %5 = arith.maximumf %3, %4 : vector<64x1xf32>
    %6 = math.rsqrt %5 : vector<64x1xf32>
    %7 = vector.broadcast %6 : vector<64x1xf32> to vector<64x128xf32>
    %8 = arith.mulf %0, %7 : vector<64x128xf32>
    %c0_2 = arith.constant 0 : index
    %c0_3 = arith.constant 0 : index
    %9 = vector.load %arg2[%c0_2, %c0_3] : memref<64x128xf32, #tpu.memory_space<vmem>>, vector<64x128xf32>
    tpu.vector_store %arg2[%c0_2, %c0_3], %8 {strides = array<i32>} : memref<64x128xf32, #tpu.memory_space<vmem>>, vector<64x128xf32>,
    return
  }
  func.func @transform_0(%arg0: i32) -> (i32, i32) {
    %c0_i32 = arith.constant 0 : i32
    %c0_i32_0 = arith.constant 0 : i32
    return %arg0, %c0_i32 : i32, i32
  }
  func.func @transform_1(%arg0: i32) -> (i32, i32) {
    %c0_i32 = arith.constant 0 : i32
    %c0_i32_0 = arith.constant 0 : i32
    return %arg0, %c0_i32 : i32, i32
  }
}

</mosaic_0001>

<bundles_post_ra>
// kernel: _normalize_all.1
= control target key start
LH: loop header
LB: loop body
LE: loop exit
PB: predicated region body
PF: predicated region fallthrough
CT: control target
= control target key end

     0   :  { %6 = vsyncpa [#allocation3], 0  ;;  %s216_s0 = inlined_call_operand.hbm [shape: f32[64,128], index: 0, kind: input, shape index: {}]   ;;  %s217_s1 = inlined_call_operand.hbm [shape: f32[64,128], index: 1, kind: output, shape index: {}]  }
   0x1   :  { %7 = vsyncpa [#allocation4], 0  ;;  %s172_s6 = smov [#allocation2]   ;;  %s124_s10 = scalar_lea.hbm %s216_s0, 1024 }
   0x2   :  { %s13_s7 = sshll.u32 %s172_s6, 4  ;;  %p125_p0 = scmp.ne.s32.totalorder %s216_s0, %s124_s10  ;;  %s14_s7 = int_to_ptr.vmem [resolvable:$true] %s13_s7 }
   0x3   :  { %p128_p1 = scmp.lt.u32.totalorder %s124_s10, %s216_s0 }
   0x5   :  { %p130_p2 = pnand %p128_p1, %p125_p0 }
   0x7   :  { %133 = shalt.err (!%p130_p2)
}
   0x8   :  { %s134_s15 = scalar_lea.vmem %s14_s7, 1024  ;;  %p139_p4 = scmp.lt.s32.totalorder %s14_s7, %s14_s7 }
   0x9   :  { %p135_p3 = scmp.ne.s32.totalorder %s14_s7, %s134_s15  ;;  %p140_p5 = scmp.lt.s32.totalorder %s134_s15, %s134_s15 }
   0xb   :  { %p141_p6 = por %p140_p5, %p139_p4 }
   0xd   :  { %p142_p7 = pnand %p141_p6, %p135_p3 }
   0xf   :  { %145 = shalt.err (!%p142_p7)
}
  0x10   :  { %s173_s16 = smov 128   ;;  %s174_s17 = smov 8  }
  0x11   :  { %19 = dma.hbm_to_vmem [thread:$0]  %s216_s0, 1024, %s14_s7, [#allocation3], %s173_s16, %s173_s16, %s174_s17  }
  0x12   :  { %168 = dma.done.wait [#allocation3], 1024  }
  0x13   :  { %169 = vsyncadd [#allocation3], 4294966272  ;;  %v25_v0 = vld [vmem:[#allocation2 + $0x10] sm:$0xff]  ;;  %v23_v1 = vld [vmem:[#allocation2] sm:$0xff]  ;;  %s175_s0 = smov [#allocation5]  }
  0x14   :  { %v26_v2 = vld [vmem:[#allocation2 + $0x18] sm:$0xff]  ;;  %v33_v3 = vmul.f32 %v25_v0, %v25_v0  ;;  %v31_v4 = vmul.f32 %v23_v1, %v23_v1  ;;  %v24_v5 = vld [vmem:[#allocation2 + $0x8] sm:$0xff]  ;;  %v27_v9 = vld [vmem:[#allocation2 + $0x20] sm:$0xff]  ;;  %s92_s20 = sshll.u32 %s175_s0, 4  ;;  %s93_s20 = int_to_ptr.vmem [resolvable:$true] %s92_s20 }
  0x15   :  { %v34_v6 = vmul.f32 %v26_v2, %v26_v2  ;;  %v32_v7 = vmul.f32 %v24_v5, %v24_v5  ;;  %v28_v8 = vld [vmem:[#allocation2 + $0x28] sm:$0xff]  ;;  %v35_v11 = vmul.f32 %v27_v9, %v27_v9  ;;  %v30_v12 = vld [vmem:[#allocation2 + $0x38] sm:$0xff]  ;;  %v29_v13 = vld [vmem:[#allocation2 + $0x30] sm:$0xff]  ;;  %s146_s21 = scalar_lea.vmem %s93_s20, 1024  ;;  %p151_p9 = scmp.lt.s32.totalorder %s93_s20, %s93_s20 }
  0x16   :  { %43 = vadd.xlane.f32.xlu1 %v33_v3  ;;  %39 = vadd.xlane.f32.xlu0 %v31_v4  ;;  %v36_v10 = vmul.f32 %v28_v8, %v28_v8  ;;  %v38_v14 = vmul.f32 %v30_v12, %v30_v12  ;;  %v37_v15 = vmul.f32 %v29_v13, %v29_v13  ;;  %p147_p8 = scmp.ne.s32.totalorder %s93_s20, %s146_s21  ;;  %p152_p10 = scmp.lt.s32.totalorder %s146_s21, %s146_s21 }
  0x18   :  { %p153_p11 = por %p152_p10, %p151_p9 }
  0x1a   :  { %45 = vadd.xlane.f32.xlu1 %v34_v6  ;;  %41 = vadd.xlane.f32.xlu0 %v32_v7  ;;  %p154_p12 = pnand %p153_p11, %p147_p8 }
  0x1e   :  { %49 = vadd.xlane.f32.xlu1 %v36_v10  ;;  %47 = vadd.xlane.f32.xlu0 %v35_v11 }
  0x22   :  { %53 = vadd.xlane.f32.xlu1 %v38_v14  ;;  %51 = vadd.xlane.f32.xlu0 %v37_v15 }
  0xa3   :  { %v44_v16 = vpop.xlane.xlu1 %43  ;;  %v40_v17 = vpop.xlane.xlu0 %39 }
  0xa4   :  { %v57_v18 = vmax.f32 %v44_v16, 1e-24  ;;  %v55_v19 = vmax.f32 %v40_v17, 1e-24 }
  0xa6   :  { %108 = vrsqrt.f32 %v57_v18 }
  0xa7   :  { %110 = vrsqrt.f32 %v55_v19  ;;  %v46_v20 = vpop.xlane.xlu1 %45  ;;  %v42_v21 = vpop.xlane.xlu0 %41 }
  0xa8   :  { %v58_v22 = vmax.f32 %v46_v20, 1e-24  ;;  %v56_v23 = vmax.f32 %v42_v21, 1e-24 }
  0xaa   :  { %112 = vrsqrt.f32 %v58_v22 }
  0xab   :  { %114 = vrsqrt.f32 %v56_v23  ;;  %v50_v24 = vpop.xlane.xlu1 %49  ;;  %v48_v25 = vpop.xlane.xlu0 %47 }
  0xac   :  { %v60_v26 = vmax.f32 %v50_v24, 1e-24  ;;  %v59_v27 = vmax.f32 %v48_v25, 1e-24 }
  0xae   :  { %116 = vrsqrt.f32 %v60_v26 }
  0xaf   :  { %118 = vrsqrt.f32 %v59_v27  ;;  %v54_v28 = vpop.xlane.xlu1 %53  ;;  %v52_v29 = vpop.xlane.xlu0 %51 }
  0xb0   :  { %v109_v30 = vpop.eup %108  ;;  %v62_v31 = vmax.f32 %v54_v28, 1e-24  ;;  %v61_v32 = vmax.f32 %v52_v29, 1e-24 }
  0xb1   :  { %v111_v33 = vpop.eup %110  ;;  %v73_v34 = vmul.f32 %v109_v30, %v25_v0 }
  0xb2   :  { %v71_v35 = vmul.f32 %v111_v33, %v23_v1  ;;  %120 = vrsqrt.f32 %v62_v31 }
  0xb3   :  { %81 = vst [vmem:[#allocation5 + $0x10] sm:$0xff] %v73_v34  ;;  %122 = vrsqrt.f32 %v61_v32 }
  0xb4   :  { %v113_v36 = vpop.eup %112  ;;  %79 = vst [vmem:[#allocation5] sm:$0xff] %v71_v35 }
  0xb5   :  { %v115_v37 = vpop.eup %114  ;;  %v74_v38 = vmul.f32 %v113_v36, %v26_v2 }
  0xb6   :  { %v72_v39 = vmul.f32 %v115_v37, %v24_v5 }
  0xb7   :  { %82 = vst [vmem:[#allocation5 + $0x18] sm:$0xff] %v74_v38 }
  0xb8   :  { %v117_v40 = vpop.eup %116  ;;  %80 = vst [vmem:[#allocation5 + $0x8] sm:$0xff] %v72_v39 }
  0xb9   :  { %v119_v41 = vpop.eup %118  ;;  %v76_v42 = vmul.f32 %v117_v40, %v28_v8 }
  0xba   :  { %v75_v43 = vmul.f32 %v119_v41, %v27_v9 }
  0xbb   :  { %84 = vst [vmem:[#allocation5 + $0x28] sm:$0xff] %v76_v42 }
  0xbc   :  { %v121_v44 = vpop.eup %120  ;;  %83 = vst [vmem:[#allocation5 + $0x20] sm:$0xff] %v75_v43 }
  0xbd   :  { %v123_v45 = vpop.eup %122  ;;  %v78_v46 = vmul.f32 %v121_v44, %v30_v12 }
  0xbe   :  { %v77_v47 = vmul.f32 %v123_v45, %v29_v13 }
  0xbf   :  { %86 = vst [vmem:[#allocation5 + $0x38] sm:$0xff] %v78_v46 }
  0xc0   :  { %85 = vst [vmem:[#allocation5 + $0x30] sm:$0xff] %v77_v47 }
  0xc1   :  { %157 = shalt.err (!%p154_p12)
}
  0xc2   :  { %s158_s24 = scalar_lea.hbm %s217_s1, 1024 }
  0xc3   :  { %p159_p13 = scmp.ne.s32.totalorder %s217_s1, %s158_s24  ;;  %p162_p0 = scmp.lt.u32.totalorder %s158_s24, %s217_s1 }
  0xc5   :  { %p164_p1 = pnand %p162_p0, %p159_p13 }
  0xc7   :  { %167 = shalt.err (!%p164_p1)
}
  0xc8   :  { %98 = dma.vmem_to_hbm [thread:$0]  %s93_s20, 1024, %s217_s1, [#allocation4], %s173_s16, %s173_s16, %s174_s17  }
  0xc9   :  { %170 = dma.done.wait [#allocation4], 1024  }
  0xca   :  { %171 = vsyncadd [#allocation4], 4294966272 }
  0xcb   :  { %102 = vsyncpa [#allocation3], 1 }
  0xcc   :  { %103 = vsyncpa [#allocation4], 1 }

</bundles_post_ra>
